<compile_context>
chip_gen: v6e
topology: v6e:2x2x1
jax: 0.10.0
libtpu: 0.0.40
codegen_flags: <defaults>
</compile_context>

<pallas_src>
import functools

import jax
import jax.numpy as jnp
from jax.experimental import pallas as pl
from jax.experimental.pallas import tpu as pltpu


def _round_up(x, m):
    return (int(x) + m - 1) // m * m


def _pad2d(a, rows, cols):
    """Zero-pad a 2D array up to (rows, cols); no copy if already that shape."""
    if a.shape == (rows, cols):
        return a
    return jnp.zeros((rows, cols), a.dtype).at[: a.shape[0], : a.shape[1]].set(a)


def ffn_kernel(x_ref, w1_ref, b1_ref, w2_ref, b2_ref, g_ref, beta_ref, o_ref, acc_ref,
               *, d_in, inv_d_in, eps):
    """Grid = (row tiles, d_hid chunks).  acc_ref: (TM, d_in_p) f32 accumulator."""
    k = pl.program_id(1)

    @pl.when(k == 0)
    def _init():
        acc_ref[...] = jnp.zeros_like(acc_ref)

    # First matmul (bf16 operands, f32 accumulation) + fused ReLU + bf16 downcast so only
    # one (TM, tk) bf16 hidden temp is live for the second matmul.
    x_bf = x_ref[...].astype(jnp.bfloat16)
    h = jnp.dot(x_bf, w1_ref[...], preferred_element_type=jnp.float32) + b1_ref[...]
    h_bf = jnp.maximum(h, 0.0).astype(jnp.bfloat16)
    acc_ref[...] += jnp.dot(h_bf, w2_ref[...], preferred_element_type=jnp.float32)

    @pl.when(k == pl.num_programs(1) - 1)
    def _epilogue():
        # bias, residual add (f32), then LayerNorm over the *real* feature width.
        x_f32 = x_ref[...].astype(jnp.float32)
        y = acc_ref[...] + b2_ref[...] + x_f32                 # padded lanes are exactly 0
        mean = jnp.sum(y, axis=-1, keepdims=True) * inv_d_in
        yc = y - mean
        if d_in != y.shape[-1]:                                # static: mask padded lanes
            lane = jax.lax.broadcasted_iota(jnp.int32, y.shape, 1)
            yc = jnp.where(lane < d_in, yc, 0.0)
        var = jnp.sum(yc * yc, axis=-1, keepdims=True) * inv_d_in
        y_hat = yc * jax.lax.rsqrt(var + eps)
        o_ref[...] = (y_hat * g_ref[...] + beta_ref[...]).astype(o_ref.dtype)


def positionwise_feed_forward(x, w1, b1, w2, b2, gamma, beta, *, eps=1e-6):
    """x: (B, S, d_in). Weights stored transposed vs. torch: w1 (d_in, d_hid), w2 (d_hid, d_in)."""
    B, S, d_in = x.shape
    d_hid = w1.shape[1]
    M = B * S

    # Lane-dense feature dims (multiples of 128).
    d_in_p = _round_up(d_in, 128)
    d_hid_p = _round_up(d_hid, 128)

    # --- generation-aware VMEM budget / core-count heuristic ---------------------------
    try:
        info = pltpu.get_tpu_info()
        vmem_cap = int(getattr(info, "vmem_capacity_bytes", 64 * 1024 * 1024))
    except Exception:
        vmem_cap = 64 * 1024 * 1024                      # conservative (v7x-sized) default
    multi_core = vmem_cap < 100 * 1024 * 1024            # v7x-like: 64 MiB VMEM, 2 TCs
    vmem_budget = max(32 << 20, min(vmem_cap - (10 << 20), 110 << 20))

    # --- row tile: big on single-TC chips, >=2 even grid steps on 2-TC chips -----------
    target_tm = 256 if multi_core else 512
    tile_m = min(target_tm, _round_up(M, 8))
    if multi_core:
        tile_m = min(tile_m, max(8, _round_up(pl.cdiv(M, 2), 8)))

    # --- hidden (K) tile so resident weights + scratch fit the VMEM budget -------------
    x_b = jnp.dtype(x.dtype).itemsize

    def est_vmem(tm, tkk):
        wb = 2 * 2 * d_in_p * tkk * 2              # w1 + w2 chunks, bf16, double-buffered
        small = 2 * (tkk + 3 * d_in_p) * 4         # b1 / b2 / gamma / beta
        xb = 2 * tm * d_in_p * x_b                 # x tile (native dtype)
        ob = 2 * tm * d_in_p * x_b                 # out tile
        acc = tm * d_in_p * 4                      # accumulator scratch
        hid = tm * tkk * 6                         # f32 hidden + bf16 copy
        return wb + small + xb + ob + acc + hid + (2 << 20)

    tk = d_hid_p
    while est_vmem(tile_m, tk) > vmem_budget and tk > 512:
        tk = max(512, _round_up(tk // 2, 128))
    while est_vmem(tile_m, tk) > vmem_budget and tile_m > 64:
        tile_m = max(64, _round_up(tile_m // 2, 8))

    d_hid_pad = _round_up(d_hid_p, tk)
    grid_k = d_hid_pad // tk

    grid_m = int(pl.cdiv(M, tile_m))
    if multi_core and grid_m > 1 and grid_m % 2 == 1:
        # re-pick tile size so the parallel axis splits evenly across both TensorCores
        tile_m = max(8, _round_up(pl.cdiv(M, grid_m + 1), 8))
        grid_m = int(pl.cdiv(M, tile_m))
    M_p = grid_m * tile_m

    f32 = jnp.float32
    bf16 = jnp.bfloat16

    # --- operand prep: pad / cast only when needed (x stays in its native dtype) -------
    x2d = x.reshape(M, d_in)
    if (M_p, d_in_p) != (M, d_in):
        x2d = jnp.zeros((M_p, d_in_p), x.dtype).at[:M, :d_in].set(x2d)

    w1_p = _pad2d(w1.astype(bf16), d_in_p, d_hid_pad)
    w2_p = _pad2d(w2.astype(bf16), d_hid_pad, d_in_p)
    b1_p = _pad2d(b1.astype(f32).reshape(1, -1), 1, d_hid_pad)
    b2_p = _pad2d(b2.astype(f32).reshape(1, -1), 1, d_in_p)
    g_p = _pad2d(gamma.astype(f32).reshape(1, -1), 1, d_in_p)
    beta_p = _pad2d(beta.astype(f32).reshape(1, -1), 1, d_in_p)

    flops = int(4 * M_p * d_in_p * d_hid_pad)
    bytes_accessed = int(2 * M_p * d_in_p * x_b + (w1_p.size + w2_p.size) * 2
                         + (b1_p.size + b2_p.size + g_p.size + beta_p.size) * 4)
    vmem_limit = int(vmem_budget)

    kernel = functools.partial(
        ffn_kernel, d_in=int(d_in), inv_d_in=float(1.0 / d_in), eps=float(eps))

    def build(single_buffer_invariant):
        def spec(shape, imap, invariant=False):
            if invariant and single_buffer_invariant:
                return pl.BlockSpec(shape, imap, pipeline_mode=pl.Buffered(1))
            return pl.BlockSpec(shape, imap)

        k_inv = grid_k == 1   # w1/w2/b1 are grid-invariant only when not K-tiled
        return pl.pallas_call(
            kernel,
            out_shape=jax.ShapeDtypeStruct((M_p, d_in_p), x.dtype),
            grid_spec=pltpu.PrefetchScalarGridSpec(
                num_scalar_prefetch=0,
                grid=(grid_m, grid_k),
                in_specs=[
                    pl.BlockSpec((tile_m, d_in_p), lambda i, k: (i, 0)),       # x rows
                    spec((d_in_p, tk), lambda i, k: (0, k), invariant=k_inv),  # w1 chunk
                    spec((1, tk), lambda i, k: (0, k), invariant=k_inv),       # b1 chunk
                    spec((tk, d_in_p), lambda i, k: (k, 0), invariant=k_inv),  # w2 chunk
                    spec((1, d_in_p), lambda i, k: (0, 0), invariant=True),    # b2
                    spec((1, d_in_p), lambda i, k: (0, 0), invariant=True),    # gamma
                    spec((1, d_in_p), lambda i, k: (0, 0), invariant=True),    # beta
                ],
                out_specs=pl.BlockSpec((tile_m, d_in_p), lambda i, k: (i, 0)),
                scratch_shapes=[pltpu.VMEM((tile_m, d_in_p), jnp.float32)],
            ),
            compiler_params=pltpu.CompilerParams(
                dimension_semantics=("parallel", "arbitrary"),
                vmem_limit_bytes=vmem_limit,
            ),
            cost_estimate=pl.CostEstimate(
                flops=flops, transcendentals=int(M_p), bytes_accessed=bytes_accessed),
        )

    args = (x2d, w1_p, b1_p, w2_p, b2_p, g_p, beta_p)
    try:
        out2d = jax.block_until_ready(build(True)(*args))
    except Exception:
        # pipeline_mode=pl.Buffered(1) not supported by this jax build -> default buffering
        out2d = build(False)(*args)

    if (M_p, d_in_p) != (M, d_in):
        out2d = out2d[:M, :d_in]
    return out2d.reshape(B, S, d_in)


def _reference_f32(x, w1, b1, w2, b2, gamma, beta, eps=1e-6):
    """Pure f32 JAX reference of the PyTorch forward (eval mode)."""
    h = jnp.maximum(x @ w1 + b1, 0.0)
    y = h @ w2 + b2 + x
    mean = jnp.mean(y, axis=-1, keepdims=True)
    var = jnp.mean((y - mean) ** 2, axis=-1, keepdims=True)
    return (y - mean) / jnp.sqrt(var + eps) * gamma + beta


def _reference_mixed(x, w1, b1, w2, b2, gamma, beta, eps=1e-6):
    """Reference at the kernel's precision: bf16 dot operands, f32 accumulation + LN."""
    bf = jnp.bfloat16
    h = jnp.dot(x.astype(bf), w1.astype(bf), preferred_element_type=jnp.float32) + b1
    h = jnp.maximum(h, 0.0)
    y = jnp.dot(h.astype(bf), w2.astype(bf), preferred_element_type=jnp.float32) + b2
    y = y + x
    mean = jnp.mean(y, axis=-1, keepdims=True)
    var = jnp.mean((y - mean) ** 2, axis=-1, keepdims=True)
    return (y - mean) * jax.lax.rsqrt(var + eps) * gamma + beta


if __name__ == "__main__":
    # Small shapes consistent with the module: tokens of width d_in (=d_v), hidden d_hid (=d_inner).
    B, S, d_in, d_hid = 2, 8, 32, 64

    key = jax.random.PRNGKey(0)
    kx, kw1, kb1, kw2, kb2 = jax.random.split(key, 5)

    x = jax.random.normal(kx, (B, S, d_in), dtype=jnp.float32)

    w1 = jax.random.uniform(kw1, (d_in, d_hid), jnp.float32, -1.0, 1.0) / jnp.sqrt(d_in)
    b1 = jax.random.uniform(kb1, (d_hid,), jnp.float32, -1.0, 1.0) / jnp.sqrt(d_in)
    w2 = jax.random.uniform(kw2, (d_hid, d_in), jnp.float32, -1.0, 1.0) / jnp.sqrt(d_hid)
    b2 = jax.random.uniform(kb2, (d_in,), jnp.float32, -1.0, 1.0) / jnp.sqrt(d_hid)
    gamma = jnp.ones((d_in,), jnp.float32)
    beta = jnp.zeros((d_in,), jnp.float32)

    out = positionwise_feed_forward(x, w1, b1, w2, b2, gamma, beta)
    out = jax.block_until_ready(out)
    assert out.shape == (B, S, d_in)

    # Tight check vs. a reference at the kernel's precision (bf16 dots, f32 accum/LN).
    ref_mixed = _reference_mixed(x, w1, b1, w2, b2, gamma, beta)
    assert jnp.allclose(out, ref_mixed, atol=5e-3, rtol=5e-3), "mismatch vs. mixed-precision reference"

    # Sanity check vs. the full-f32 PyTorch-equivalent reference (bf16 matmul tolerance).
    ref_f32 = _reference_f32(x, w1, b1, w2, b2, gamma, beta)
    assert jnp.allclose(out, ref_f32, atol=5e-2, rtol=5e-2), "mismatch vs. f32 reference"

    print("KERNEL_OK")
</pallas_src>

<mosaic_0001>
module attributes {stable_mosaic.version = 11 : i64} {
  func.func @ffn_kernel(%arg0: i32, %arg1: i32, %arg2: memref<8x128xf32, #tpu.memory_space<vmem>>, %arg3: memref<128x128xbf16, #tpu.memory_space<vmem>>, %arg4: memref<1x128xf32, #tpu.memory_space<vmem>>, %arg5: memref<128x128xbf16, #tpu.memory_space<vmem>>, %arg6: memref<1x128xf32, #tpu.memory_space<vmem>>, %arg7: memref<1x128xf32, #tpu.memory_space<vmem>>, %arg8: memref<1x128xf32, #tpu.memory_space<vmem>>, %arg9: memref<8x128xf32, #tpu.memory_space<vmem>>, %arg10: memref<8x128xf32, #tpu.memory_space<vmem>>) attributes {dimension_semantics = [#tpu.dimension_semantics<parallel>, #tpu.dimension_semantics<arbitrary>], iteration_bounds = array<i64: 2, 1>, scalar_prefetch = 0 : i64, scratch_operands = 1 : i64, tpu.core_type = #tpu.core_type<tc>, window_params = [{transform_indices = @transform_0, window_bounds = array<i64: 8, 128>}, {pipeline_mode = #tpu.pipeline_mode<synchronous>, transform_indices = @transform_1, window_bounds = array<i64: 128, 128>}, {pipeline_mode = #tpu.pipeline_mode<synchronous>, transform_indices = @transform_2, window_bounds = array<i64: 1, 128>}, {pipeline_mode = #tpu.pipeline_mode<synchronous>, transform_indices = @transform_3, window_bounds = array<i64: 128, 128>}, {pipeline_mode = #tpu.pipeline_mode<synchronous>, transform_indices = @transform_4, window_bounds = array<i64: 1, 128>}, {pipeline_mode = #tpu.pipeline_mode<synchronous>, transform_indices = @transform_5, window_bounds = array<i64: 1, 128>}, {pipeline_mode = #tpu.pipeline_mode<synchronous>, transform_indices = @transform_6, window_bounds = array<i64: 1, 128>}, {transform_indices = @transform_7, window_bounds = array<i64: 8, 128>}]} {
    %c0_i32 = arith.constant 0 : i32
    %0 = arith.cmpi eq, %arg1, %c0_i32 : i32
    %1 = arith.extui %0 : i1 to i32
    %c0_i32_0 = arith.constant 0 : i32
    %2 = arith.cmpi ne, %1, %c0_i32_0 : i32
    scf.if %2 {
      %cst_16 = arith.constant 0.000000e+00 : f32
      %21 = vector.broadcast %cst_16 : f32 to vector<8x128xf32>
      %c0_17 = arith.constant 0 : index
      %c0_18 = arith.constant 0 : index
      %22 = vector.load %arg10[%c0_17, %c0_18] : memref<8x128xf32, #tpu.memory_space<vmem>>, vector<8x128xf32>
      tpu.vector_store %arg10[%c0_17, %c0_18], %21 {strides = array<i32>} : memref<8x128xf32, #tpu.memory_space<vmem>>, vector<8x128xf32>,
    } else {
    }
    %c0 = arith.constant 0 : index
    %c0_1 = arith.constant 0 : index
    %3 = vector.load %arg2[%c0, %c0_1] : memref<8x128xf32, #tpu.memory_space<vmem>>, vector<8x128xf32>
    %4 = arith.truncf %3 : vector<8x128xf32> to vector<8x128xbf16>
    %c0_2 = arith.constant 0 : index
    %c0_3 = arith.constant 0 : index
    %5 = vector.load %arg3[%c0_2, %c0_3] : memref<128x128xbf16, #tpu.memory_space<vmem>>, vector<128x128xbf16>
    %cst = arith.constant dense<0.000000e+00> : vector<8x128xf32>
    %6 = tpu.matmul %4, %5, %cst {dimension_numbers = #tpu.dot_dimension_numbers<[1], [0], [0], [1], [0, 0, 1, 1], [], []>} : vector<8x128xbf16>, vector<128x128xbf16>, vector<8x128xf32> -> vector<8x128xf32>
    %c0_4 = arith.constant 0 : index
    %c0_5 = arith.constant 0 : index
    %7 = vector.load %arg4[%c0_4, %c0_5] : memref<1x128xf32, #tpu.memory_space<vmem>>, vector<1x128xf32>
    %8 = vector.broadcast %7 : vector<1x128xf32> to vector<8x128xf32>
    %9 = arith.addf %6, %8 : vector<8x128xf32>
    %cst_6 = arith.constant 0.000000e+00 : f32
    %10 = vector.broadcast %cst_6 : f32 to vector<8x128xf32>
    %11 = arith.maximumf %9, %10 : vector<8x128xf32>
    %12 = arith.truncf %11 : vector<8x128xf32> to vector<8x128xbf16>
    %c0_7 = arith.constant 0 : index
    %c0_8 = arith.constant 0 : index
    %13 = vector.load %arg10[%c0_7, %c0_8] : memref<8x128xf32, #tpu.memory_space<vmem>>, vector<8x128xf32>
    %c0_9 = arith.constant 0 : index
    %c0_10 = arith.constant 0 : index
    %14 = vector.load %arg5[%c0_9, %c0_10] : memref<128x128xbf16, #tpu.memory_space<vmem>>, vector<128x128xbf16>
    %cst_11 = arith.constant dense<0.000000e+00> : vector<8x128xf32>
    %15 = tpu.matmul %12, %14, %cst_11 {dimension_numbers = #tpu.dot_dimension_numbers<[1], [0], [0], [1], [0, 0, 1, 1], [], []>} : vector<8x128xbf16>, vector<128x128xbf16>, vector<8x128xf32> -> vector<8x128xf32>
    %16 = arith.addf %13, %15 : vector<8x128xf32>
    %c0_12 = arith.constant 0 : index
    %c0_13 = arith.constant 0 : index
    %17 = vector.load %arg10[%c0_12, %c0_13] : memref<8x128xf32, #tpu.memory_space<vmem>>, vector<8x128xf32>
    tpu.vector_store %arg10[%c0_12, %c0_13], %16 {strides = array<i32>} : memref<8x128xf32, #tpu.memory_space<vmem>>, vector<8x128xf32>,
    %c0_i32_14 = arith.constant 0 : i32
    %18 = arith.cmpi eq, %arg1, %c0_i32_14 : i32
    %19 = arith.extui %18 : i1 to i32
    %c0_i32_15 = arith.constant 0 : i32
    %20 = arith.cmpi ne, %19, %c0_i32_15 : i32
    scf.if %20 {
      %c0_16 = arith.constant 0 : index
      %c0_17 = arith.constant 0 : index
      %21 = vector.load %arg2[%c0_16, %c0_17] : memref<8x128xf32, #tpu.memory_space<vmem>>, vector<8x128xf32>
      %c0_18 = arith.constant 0 : index
      %c0_19 = arith.constant 0 : index
      %22 = vector.load %arg10[%c0_18, %c0_19] : memref<8x128xf32, #tpu.memory_space<vmem>>, vector<8x128xf32>
      %c0_20 = arith.constant 0 : index
      %c0_21 = arith.constant 0 : index
      %23 = vector.load %arg6[%c0_20, %c0_21] : memref<1x128xf32, #tpu.memory_space<vmem>>, vector<1x128xf32>
      %24 = vector.broadcast %23 : vector<1x128xf32> to vector<8x128xf32>
      %25 = arith.addf %22, %24 : vector<8x128xf32>
      %26 = arith.addf %25, %21 : vector<8x128xf32>
      %cst_22 = arith.constant dense<0.000000e+00> : vector<8xf32>
      %27 = vector.multi_reduction <add>, %26, %cst_22 [1] : vector<8x128xf32> to vector<8xf32>
      %28 = vector.shape_cast %27 : vector<8xf32> to vector<8x1xf32>
      %cst_23 = arith.constant 3.125000e-02 : f32
      %29 = vector.broadcast %cst_23 : f32 to vector<8x1xf32>
      %30 = arith.mulf %28, %29 : vector<8x1xf32>
      %31 = vector.broadcast %30 : vector<8x1xf32> to vector<8x128xf32>
      %32 = arith.subf %26, %31 : vector<8x128xf32>
      %33 = tpu.iota {dimensions = array<i32: 1>} : vector<8x128xi32>
      %c32_i32 = arith.constant 32 : i32
      %34 = vector.broadcast %c32_i32 : i32 to vector<8x128xi32>
      %35 = arith.cmpi slt, %33, %34 : vector<8x128xi32>
      %cst_24 = arith.constant 0.000000e+00 : f32
      %36 = vector.broadcast %cst_24 : f32 to vector<8x128xf32>
      %37 = arith.select %35, %32, %36 : vector<8x128xi1>, vector<8x128xf32>
      %38 = arith.mulf %37, %37 : vector<8x128xf32>
      %cst_25 = arith.constant dense<0.000000e+00> : vector<8xf32>
      %39 = vector.multi_reduction <add>, %38, %cst_25 [1] : vector<8x128xf32> to vector<8xf32>
      %40 = vector.shape_cast %39 : vector<8xf32> to vector<8x1xf32>
      %cst_26 = arith.constant 3.125000e-02 : f32
      %41 = vector.broadcast %cst_26 : f32 to vector<8x1xf32>
      %42 = arith.mulf %40, %41 : vector<8x1xf32>
      %cst_27 = arith.constant 9.99999997E-7 : f32
      %43 = vector.broadcast %cst_27 : f32 to vector<8x1xf32>
      %44 = arith.addf %42, %43 : vector<8x1xf32>
      %45 = math.rsqrt %44 : vector<8x1xf32>
      %46 = vector.broadcast %45 : vector<8x1xf32> to vector<8x128xf32>
      %47 = arith.mulf %37, %46 : vector<8x128xf32>
      %c0_28 = arith.constant 0 : index
      %c0_29 = arith.constant 0 : index
      %48 = vector.load %arg7[%c0_28, %c0_29] : memref<1x128xf32, #tpu.memory_space<vmem>>, vector<1x128xf32>
      %49 = vector.broadcast %48 : vector<1x128xf32> to vector<8x128xf32>
      %50 = arith.mulf %47, %49 : vector<8x128xf32>
      %c0_30 = arith.constant 0 : index
      %c0_31 = arith.constant 0 : index
      %51 = vector.load %arg8[%c0_30, %c0_31] : memref<1x128xf32, #tpu.memory_space<vmem>>, vector<1x128xf32>
      %52 = vector.broadcast %51 : vector<1x128xf32> to vector<8x128xf32>
      %53 = arith.addf %50, %52 : vector<8x128xf32>
      %c0_32 = arith.constant 0 : index
      %c0_33 = arith.constant 0 : index
      %54 = vector.load %arg9[%c0_32, %c0_33] : memref<8x128xf32, #tpu.memory_space<vmem>>, vector<8x128xf32>
      tpu.vector_store %arg9[%c0_32, %c0_33], %53 {strides = array<i32>} : memref<8x128xf32, #tpu.memory_space<vmem>>, vector<8x128xf32>,
    } else {
    }
    return
  }
  func.func @transform_0(%arg0: i32, %arg1: i32) -> (i32, i32) {
    %c0_i32 = arith.constant 0 : i32
    %c0_i32_0 = arith.constant 0 : i32
    return %arg0, %c0_i32 : i32, i32
  }
  func.func @transform_1(%arg0: i32, %arg1: i32) -> (i32, i32) {
    %c0_i32 = arith.constant 0 : i32
    %c0_i32_0 = arith.constant 0 : i32
    return %c0_i32, %arg1 : i32, i32
  }
  func.func @transform_2(%arg0: i32, %arg1: i32) -> (i32, i32) {
    %c0_i32 = arith.constant 0 : i32
    %c0_i32_0 = arith.constant 0 : i32
    return %c0_i32, %arg1 : i32, i32
  }
  func.func @transform_3(%arg0: i32, %arg1: i32) -> (i32, i32) {
    %c0_i32 = arith.constant 0 : i32
    %c0_i32_0 = arith.constant 0 : i32
    return %arg1, %c0_i32 : i32, i32
  }
  func.func @transform_4(%arg0: i32, %arg1: i32) -> (i32, i32) {
    %c0_i32 = arith.constant 0 : i32
    %c0_i32_0 = arith.constant 0 : i32
    %c0_i32_1 = arith.constant 0 : i32
    return %c0_i32, %c0_i32_0 : i32, i32
  }
  func.func @transform_5(%arg0: i32, %arg1: i32) -> (i32, i32) {
    %c0_i32 = arith.constant 0 : i32
    %c0_i32_0 = arith.constant 0 : i32
    %c0_i32_1 = arith.constant 0 : i32
    return %c0_i32, %c0_i32_0 : i32, i32
  }
  func.func @transform_6(%arg0: i32, %arg1: i32) -> (i32, i32) {
    %c0_i32 = arith.constant 0 : i32
    %c0_i32_0 = arith.constant 0 : i32
    %c0_i32_1 = arith.constant 0 : i32
    return %c0_i32, %c0_i32_0 : i32, i32
  }
  func.func @transform_7(%arg0: i32, %arg1: i32) -> (i32, i32) {
    %c0_i32 = arith.constant 0 : i32
    %c0_i32_0 = arith.constant 0 : i32
    return %arg0, %c0_i32 : i32, i32
  }
}

module attributes {stable_mosaic.version = 11 : i64} {
  func.func @ffn_kernel(%arg0: i32, %arg1: i32, %arg2: memref<8x128xf32, #tpu.memory_space<vmem>>, %arg3: memref<128x128xbf16, #tpu.memory_space<vmem>>, %arg4: memref<1x128xf32, #tpu.memory_space<vmem>>, %arg5: memref<128x128xbf16, #tpu.memory_space<vmem>>, %arg6: memref<1x128xf32, #tpu.memory_space<vmem>>, %arg7: memref<1x128xf32, #tpu.memory_space<vmem>>, %arg8: memref<1x128xf32, #tpu.memory_space<vmem>>, %arg9: memref<8x128xf32, #tpu.memory_space<vmem>>, %arg10: memref<8x128xf32, #tpu.memory_space<vmem>>) attributes {dimension_semantics = [#tpu.dimension_semantics<parallel>, #tpu.dimension_semantics<arbitrary>], iteration_bounds = array<i64: 2, 1>, scalar_prefetch = 0 : i64, scratch_operands = 1 : i64, tpu.core_type = #tpu.core_type<tc>, window_params = [{transform_indices = @transform_0, window_bounds = array<i64: 8, 128>}, {transform_indices = @transform_1, window_bounds = array<i64: 128, 128>}, {transform_indices = @transform_2, window_bounds = array<i64: 1, 128>}, {transform_indices = @transform_3, window_bounds = array<i64: 128, 128>}, {pipeline_mode = #tpu.pipeline_mode<synchronous>, transform_indices = @transform_4, window_bounds = array<i64: 1, 128>}, {pipeline_mode = #tpu.pipeline_mode<synchronous>, transform_indices = @transform_5, window_bounds = array<i64: 1, 128>}, {pipeline_mode = #tpu.pipeline_mode<synchronous>, transform_indices = @transform_6, window_bounds = array<i64: 1, 128>}, {transform_indices = @transform_7, window_bounds = array<i64: 8, 128>}]} {
    %c0_i32 = arith.constant 0 : i32
    %0 = arith.cmpi eq, %arg1, %c0_i32 : i32
    %1 = arith.extui %0 : i1 to i32
    %c0_i32_0 = arith.constant 0 : i32
    %2 = arith.cmpi ne, %1, %c0_i32_0 : i32
    scf.if %2 {
      %cst_16 = arith.constant 0.000000e+00 : f32
      %21 = vector.broadcast %cst_16 : f32 to vector<8x128xf32>
      %c0_17 = arith.constant 0 : index
      %c0_18 = arith.constant 0 : index
      %22 = vector.load %arg10[%c0_17, %c0_18] : memref<8x128xf32, #tpu.memory_space<vmem>>, vector<8x128xf32>
      tpu.vector_store %arg10[%c0_17, %c0_18], %21 {strides = array<i32>} : memref<8x128xf32, #tpu.memory_space<vmem>>, vector<8x128xf32>,
    } else {
    }
    %c0 = arith.constant 0 : index
    %c0_1 = arith.constant 0 : index
    %3 = vector.load %arg2[%c0, %c0_1] : memref<8x128xf32, #tpu.memory_space<vmem>>, vector<8x128xf32>
    %4 = arith.truncf %3 : vector<8x128xf32> to vector<8x128xbf16>
    %c0_2 = arith.constant 0 : index
    %c0_3 = arith.constant 0 : index
    %5 = vector.load %arg3[%c0_2, %c0_3] : memref<128x128xbf16, #tpu.memory_space<vmem>>, vector<128x128xbf16>
    %cst = arith.constant dense<0.000000e+00> : vector<8x128xf32>
    %6 = tpu.matmul %4, %5, %cst {dimension_numbers = #tpu.dot_dimension_numbers<[1], [0], [0], [1], [0, 0, 1, 1], [], []>} : vector<8x128xbf16>, vector<128x128xbf16>, vector<8x128xf32> -> vector<8x128xf32>
    %c0_4 = arith.constant 0 : index
    %c0_5 = arith.constant 0 : index
    %7 = vector.load %arg4[%c0_4, %c0_5] : memref<1x128xf32, #tpu.memory_space<vmem>>, vector<1x128xf32>
    %8 = vector.broadcast %7 : vector<1x128xf32> to vector<8x128xf32>
    %9 = arith.addf %6, %8 : vector<8x128xf32>
    %cst_6 = arith.constant 0.000000e+00 : f32
    %10 = vector.broadcast %cst_6 : f32 to vector<8x128xf32>
    %11 = arith.maximumf %9, %10 : vector<8x128xf32>
    %12 = arith.truncf %11 : vector<8x128xf32> to vector<8x128xbf16>
    %c0_7 = arith.constant 0 : index
    %c0_8 = arith.constant 0 : index
    %13 = vector.load %arg10[%c0_7, %c0_8] : memref<8x128xf32, #tpu.memory_space<vmem>>, vector<8x128xf32>
    %c0_9 = arith.constant 0 : index
    %c0_10 = arith.constant 0 : index
    %14 = vector.load %arg5[%c0_9, %c0_10] : memref<128x128xbf16, #tpu.memory_space<vmem>>, vector<128x128xbf16>
    %cst_11 = arith.constant dense<0.000000e+00> : vector<8x128xf32>
    %15 = tpu.matmul %12, %14, %cst_11 {dimension_numbers = #tpu.dot_dimension_numbers<[1], [0], [0], [1], [0, 0, 1, 1], [], []>} : vector<8x128xbf16>, vector<128x128xbf16>, vector<8x128xf32> -> vector<8x128xf32>
    %16 = arith.addf %13, %15 : vector<8x128xf32>
    %c0_12 = arith.constant 0 : index
    %c0_13 = arith.constant 0 : index
    %17 = vector.load %arg10[%c0_12, %c0_13] : memref<8x128xf32, #tpu.memory_space<vmem>>, vector<8x128xf32>
    tpu.vector_store %arg10[%c0_12, %c0_13], %16 {strides = array<i32>} : memref<8x128xf32, #tpu.memory_space<vmem>>, vector<8x128xf32>,
    %c0_i32_14 = arith.constant 0 : i32
    %18 = arith.cmpi eq, %arg1, %c0_i32_14 : i32
    %19 = arith.extui %18 : i1 to i32
    %c0_i32_15 = arith.constant 0 : i32
    %20 = arith.cmpi ne, %19, %c0_i32_15 : i32
    scf.if %20 {
      %c0_16 = arith.constant 0 : index
      %c0_17 = arith.constant 0 : index
      %21 = vector.load %arg2[%c0_16, %c0_17] : memref<8x128xf32, #tpu.memory_space<vmem>>, vector<8x128xf32>
      %c0_18 = arith.constant 0 : index
      %c0_19 = arith.constant 0 : index
      %22 = vector.load %arg10[%c0_18, %c0_19] : memref<8x128xf32, #tpu.memory_space<vmem>>, vector<8x128xf32>
      %c0_20 = arith.constant 0 : index
      %c0_21 = arith.constant 0 : index
      %23 = vector.load %arg6[%c0_20, %c0_21] : memref<1x128xf32, #tpu.memory_space<vmem>>, vector<1x128xf32>
      %24 = vector.broadcast %23 : vector<1x128xf32> to vector<8x128xf32>
      %25 = arith.addf %22, %24 : vector<8x128xf32>
      %26 = arith.addf %25, %21 : vector<8x128xf32>
      %cst_22 = arith.constant dense<0.000000e+00> : vector<8xf32>
      %27 = vector.multi_reduction <add>, %26, %cst_22 [1] : vector<8x128xf32> to vector<8xf32>
      %28 = vector.shape_cast %27 : vector<8xf32> to vector<8x1xf32>
      %cst_23 = arith.constant 3.125000e-02 : f32
      %29 = vector.broadcast %cst_23 : f32 to vector<8x1xf32>
      %30 = arith.mulf %28, %29 : vector<8x1xf32>
      %31 = vector.broadcast %30 : vector<8x1xf32> to vector<8x128xf32>
      %32 = arith.subf %26, %31 : vector<8x128xf32>
      %33 = tpu.iota {dimensions = array<i32: 1>} : vector<8x128xi32>
      %c32_i32 = arith.constant 32 : i32
      %34 = vector.broadcast %c32_i32 : i32 to vector<8x128xi32>
      %35 = arith.cmpi slt, %33, %34 : vector<8x128xi32>
      %cst_24 = arith.constant 0.000000e+00 : f32
      %36 = vector.broadcast %cst_24 : f32 to vector<8x128xf32>
      %37 = arith.select %35, %32, %36 : vector<8x128xi1>, vector<8x128xf32>
      %38 = arith.mulf %37, %37 : vector<8x128xf32>
      %cst_25 = arith.constant dense<0.000000e+00> : vector<8xf32>
      %39 = vector.multi_reduction <add>, %38, %cst_25 [1] : vector<8x128xf32> to vector<8xf32>
      %40 = vector.shape_cast %39 : vector<8xf32> to vector<8x1xf32>
      %cst_26 = arith.constant 3.125000e-02 : f32
      %41 = vector.broadcast %cst_26 : f32 to vector<8x1xf32>
      %42 = arith.mulf %40, %41 : vector<8x1xf32>
      %cst_27 = arith.constant 9.99999997E-7 : f32
      %43 = vector.broadcast %cst_27 : f32 to vector<8x1xf32>
      %44 = arith.addf %42, %43 : vector<8x1xf32>
      %45 = math.rsqrt %44 : vector<8x1xf32>
      %46 = vector.broadcast %45 : vector<8x1xf32> to vector<8x128xf32>
      %47 = arith.mulf %37, %46 : vector<8x128xf32>
      %c0_28 = arith.constant 0 : index
      %c0_29 = arith.constant 0 : index
      %48 = vector.load %arg7[%c0_28, %c0_29] : memref<1x128xf32, #tpu.memory_space<vmem>>, vector<1x128xf32>
      %49 = vector.broadcast %48 : vector<1x128xf32> to vector<8x128xf32>
      %50 = arith.mulf %47, %49 : vector<8x128xf32>
      %c0_30 = arith.constant 0 : index
      %c0_31 = arith.constant 0 : index
      %51 = vector.load %arg8[%c0_30, %c0_31] : memref<1x128xf32, #tpu.memory_space<vmem>>, vector<1x128xf32>
      %52 = vector.broadcast %51 : vector<1x128xf32> to vector<8x128xf32>
      %53 = arith.addf %50, %52 : vector<8x128xf32>
      %c0_32 = arith.constant 0 : index
      %c0_33 = arith.constant 0 : index
      %54 = vector.load %arg9[%c0_32, %c0_33] : memref<8x128xf32, #tpu.memory_space<vmem>>, vector<8x128xf32>
      tpu.vector_store %arg9[%c0_32, %c0_33], %53 {strides = array<i32>} : memref<8x128xf32, #tpu.memory_space<vmem>>, vector<8x128xf32>,
    } else {
    }
    return
  }
  func.func @transform_0(%arg0: i32, %arg1: i32) -> (i32, i32) {
    %c0_i32 = arith.constant 0 : i32
    %c0_i32_0 = arith.constant 0 : i32
    return %arg0, %c0_i32 : i32, i32
  }
  func.func @transform_1(%arg0: i32, %arg1: i32) -> (i32, i32) {
    %c0_i32 = arith.constant 0 : i32
    %c0_i32_0 = arith.constant 0 : i32
    return %c0_i32, %arg1 : i32, i32
  }
  func.func @transform_2(%arg0: i32, %arg1: i32) -> (i32, i32) {
    %c0_i32 = arith.constant 0 : i32
    %c0_i32_0 = arith.constant 0 : i32
    return %c0_i32, %arg1 : i32, i32
  }
  func.func @transform_3(%arg0: i32, %arg1: i32) -> (i32, i32) {
    %c0_i32 = arith.constant 0 : i32
    %c0_i32_0 = arith.constant 0 : i32
    return %arg1, %c0_i32 : i32, i32
  }
  func.func @transform_4(%arg0: i32, %arg1: i32) -> (i32, i32) {
    %c0_i32 = arith.constant 0 : i32
    %c0_i32_0 = arith.constant 0 : i32
    %c0_i32_1 = arith.constant 0 : i32
    return %c0_i32, %c0_i32_0 : i32, i32
  }
  func.func @transform_5(%arg0: i32, %arg1: i32) -> (i32, i32) {
    %c0_i32 = arith.constant 0 : i32
    %c0_i32_0 = arith.constant 0 : i32
    %c0_i32_1 = arith.constant 0 : i32
    return %c0_i32, %c0_i32_0 : i32, i32
  }
  func.func @transform_6(%arg0: i32, %arg1: i32) -> (i32, i32) {
    %c0_i32 = arith.constant 0 : i32
    %c0_i32_0 = arith.constant 0 : i32
    %c0_i32_1 = arith.constant 0 : i32
    return %c0_i32, %c0_i32_0 : i32, i32
  }
  func.func @transform_7(%arg0: i32, %arg1: i32) -> (i32, i32) {
    %c0_i32 = arith.constant 0 : i32
    %c0_i32_0 = arith.constant 0 : i32
    return %arg0, %c0_i32 : i32, i32
  }
}

</mosaic_0001>

<bundles_post_ra>
// kernel: tpu_custom_call.1
= control target key start
LH: loop header
LB: loop body
LE: loop exit
PB: predicated region body
PF: predicated region fallthrough
CT: control target
= control target key end

     0   :  { %s1374_s0 = inlined_call_operand.hbm [shape: f32[16,128], index: 0, kind: input, shape index: {}]   ;;  %s1375_s1 = inlined_call_operand.hbm [shape: bf16[128,128], index: 1, kind: input, shape index: {}]   ;;  %s1376_s2 = inlined_call_operand.vmem [shape: f32[1,128], index: 2, kind: input, shape index: {}]   ;;  %s1377_s3 = inlined_call_operand.hbm [shape: bf16[128,128], index: 3, kind: input, shape index: {}]   ;;  %s1378_s4 = inlined_call_operand.vmem [shape: f32[1,128], index: 4, kind: input, shape index: {}]   ;;  %s1379_s5 = inlined_call_operand.vmem [shape: f32[1,128], index: 5, kind: input, shape index: {}]   ;;  %s1380_s6 = inlined_call_operand.vmem [shape: f32[1,128], index: 6, kind: input, shape index: {}]   ;;  %s1381_s7 = inlined_call_operand.hbm [shape: f32[16,128], index: 7, kind: output, shape index: {}]  }
   0x1   :  { %1386 = sst [smem:[#allocation14_spill]] %s1375_s1 }
   0x2   :  { %1387 = sst [smem:[#allocation15_spill]] %s1377_s3 }
   0x3   :  { %12 = vsyncpa [#allocation4], 0 }
   0x4   :  { %14 = vsyncpa [#allocation4 + $0x1], 0 }
   0x5   :  { %15 = vsyncpa [#allocation7], 0 }
   0x6   :  { %16 = vsyncpa [#allocation5], 0 }
   0x7   :  { %18 = vsyncpa [#allocation5 + $0x1], 0  ;;  %s1181_s24 = smov 0   ;;  %s1183_s25 = smov 0  }
   0x8   :  { %s1185_s26 = smov 0   ;;  %s1187_s27 = smov 0  }
   0x9   :  { %s1189_s28 = smov 0   ;;  %s1191_s29 = smov 0  }
   0xa LB: > { %s766_s30 = sadd.s32 4294967295, %s1131_s29   ;;  %s767_s8 = sadd.s32 4294967294, %s1131_s29   ;;  %s1131_s29 = sphi %s1191_s29, %s24_s29   ;;  %s1127_s28 = sphi %s1189_s28, %s1408_s28   ;;  %s1123_s27 = sphi %s1187_s27, %s1407_s27   ;;  %s1119_s26 = sphi %s1185_s26, %s1406_s26   ;;  %s1115_s25 = sphi %s1183_s25, %s1405_s25   ;;  %s1111_s24 = sphi %s1181_s24, %s1404_s24  }
   0xb   : > { %p56_p0 = scmp.ne.s32.totalorder %s1115_s25, %s1111_s24  ;;  %p1215_p1 = scmp.eq.s32.totalorder %s766_s30, 0 }
   0xc   : > { %p1219_p2 = scmp.eq.s32.totalorder %s766_s30, 1  ;;  %p227_p3 = scmp.eq.s32.totalorder %s767_s8, 1 }
   0xd   : > { %s1388_s9 = scalar_select %p1215_p1, 1, 0 }
   0xe   : > { %p1225_p4 = por %p1215_p1, %p56_p0  ;;  %p768_p5 = scmp.ge.s32.totalorder %s1131_s29, 1 }
   0xf   : > { %p1230_p6 = por %p227_p3, %p56_p0  ;;  %p234_p7 = scmp.lt.s32.totalorder %s1131_s29, 3 }
  0x10   : > { %s1390_s11 = scalar_select %p1225_p4, 1, 0 }
  0x11   : > { %s1391_s12 = scalar_select %p1230_p6, 1, 0 }
  0x12   : > { %p1235_p8 = pnand %p768_p5, %p234_p7  ;;  %s1133_s14 = smov [#allocation6]  }
  0x13   : > { %s248_s15 = sshll.u32 %s1133_s14, 4  ;;  %s1134_s17 = smov [#allocation8]   ;;  %s249_s15 = int_to_ptr.vmem [resolvable:$true] %s248_s15 }
  0x14   : > { %p874_p9 = pneg %p1235_p8  ;;  %s270_s18 = sshll.u32 %s1134_s17, 4  ;;  %s271_s18 = int_to_ptr.vmem [resolvable:$true] %s270_s18 }
  0x15   : > { %s978_s19 = scalar_lea.vmem %s249_s15, 1024  ;;  %p986_p5 = scmp.lt.s32.totalorder %s249_s15, %s249_s15 }
  0x16   : > { %p1244_p11 = pnand %p874_p9, %p1215_p1  ;;  %p979_p13 = scmp.ne.s32.totalorder %s249_s15, %s978_s19 }
  0x17   : > { %p987_p7 = scmp.lt.s32.totalorder %s978_s19, %s978_s19 }
  0x18   : > { %p969_p12 = pneg %p1244_p11 }
  0x19   : > { %p988_p10 = por %p987_p7, %p986_p5 }
  0x1a   : > { %p981_p0 = pnand %p979_p13, %p969_p12 }
  0x1c   : > { %p982_p3 = pneg %p981_p0 }
  0x1e   : > { %p989_p9 = pnand %p988_p10, %p982_p3 }
  0x20   : > { %992 = shalt.err (!%p989_p9)
}
  0x21   : > { %s1135_s20 = smov 64   ;;  %s1136_s21 = smov 4  }
  0x22   : > { %s1394_s1 = sld [smem:[#allocation14_spill]]  ;;  %s1004_s30 = scalar_lea.vmem %s271_s18, 1024 }
  0x23   : > { %p1005_p6 = scmp.ne.s32.totalorder %s271_s18, %s1004_s30  ;;  %p1012_p1 = scmp.lt.s32.totalorder %s271_s18, %s271_s18 }
  0x24   : > { %p1013_p4 = scmp.lt.s32.totalorder %s1004_s30, %s1004_s30 }
  0x25   : > { %p1007_p13 = pnand %p1005_p6, %p969_p12 }
  0x26   : > { %p1014_p5 = por %p1013_p4, %p1012_p1 }
  0x27   : > { %p1008_p0 = pneg %p1007_p13 }
  0x28   : > { %877 = dma.hbm_to_vmem [thread:$0]  (!%p1244_p11), %s1394_s1, 1024, %s249_s15, [#allocation7], %s1135_s20, %s1135_s20, %s1136_s21  }
  0x29   : > { %p1015_p10 = pnand %p1014_p5, %p1008_p0 }
  0x2b   : > { %1018 = shalt.err (!%p1015_p10)
}
  0x2c   : > { %s1395_s3 = sld [smem:[#allocation15_spill]]  ;;  %s36_s15 = sadd.s32 1, %s1127_s28 }
  0x2d   : > { %s43_s17 = sadd.s32 1, %s1119_s26  ;;  %p38_p1 = scmp.ge.s32.totalorder %s36_s15, 2 }
  0x2e   : > { %p50_p4 = scmp.ne.s32.totalorder %s1119_s26, %s1115_s25  ;;  %p51_p6 = scmp.eq.s32.totalorder %s1131_s29, 0 }
  0x2f   : > { %p891_p12 = scmp.lt.s32.totalorder %s1131_s29, 2  ;;  %s1410_s15 = smov (%p38_p1, %s36_s15), 0 }
  0x30   : > { %1396 = sst [smem:[#allocation13_spill]] %s1410_s15  ;;  %p52_p3 = por %p51_p6, %p50_p4 }
  0x31   : > { %p1276_p7 = por %p1219_p2, %p50_p4  ;;  %s40_s19 = ssub.s32 %s1127_s28, %s1410_s15 }
  0x32   : > { %880 = dma.hbm_to_vmem [thread:$0]  (!%p1244_p11), %s1395_s3, 1024, %s271_s18, [#allocation7], %s1135_s20, %s1135_s20, %s1136_s21  }
  0x33   : > { %s293_s22 = sand.u32 1, %s1119_s26   ;;  %p41_p9 = scmp.eq.s32.totalorder %s40_s19, 0 }
  0x34   : > { %s773_s18 = sshll.u32 %s293_s22, 3  ;;  %s774_s20 = sshll.u32 %s1127_s28, 7 }
  0x35   : > { %s1285_s21 = scalar_select %p41_p9, %s1119_s26, %s43_s17  }
  0x36   : > { %s302_s8 = scalar_lea.hbm %s1374_s0, %s774_s20  ;;  %s297_s14 = scalar_lea.vmem [#allocation3], %s773_s18 }
  0x37   : > { %s304_s1 = sshll.u32 %s297_s14, 4  ;;  %p1292_p11 = pnand %p891_p12, %p52_p3  ;;  %s305_s1 = int_to_ptr.vmem [resolvable:$true] %s304_s1 }
  0x38   : > { %s294_s3 = scalar_lea.sflag [#allocation4], %s293_s22  ;;  %s1032_s19 = scalar_lea.vmem %s305_s1, 128 }
  0x39   : > { %p1021_p2 = pneg %p1292_p11  ;;  %p1033_p13 = scmp.ne.s32.totalorder %s305_s1, %s1032_s19 }
  0x3a   : > { %s1137_s17 = smov [#allocation3]  }
  0x3b   : > { %p1035_p0 = pnand %p1033_p13, %p1021_p2  ;;  %s1037_s15 = sshll.u32 %s1137_s17, 4  ;;  %s1038_s15 = int_to_ptr.vmem [resolvable:$false] %s1037_s15 }
  0x3c   : > { %s1039_s20 = scalar_lea.vmem %s1038_s15, 256  ;;  %p1040_p10 = scmp.lt.s32.totalorder %s305_s1, %s1038_s15 }
  0x3d   : > { %p1036_p5 = pneg %p1035_p0  ;;  %p1041_p1 = scmp.lt.s32.totalorder %s1039_s20, %s1032_s19 }
  0x3f   : > { %p1042_p4 = por %p1041_p1, %p1040_p10 }
  0x41   : > { %p1043_p6 = pnand %p1042_p4, %p1036_p5 }
  0x43   : > { %1046 = shalt.err (!%p1043_p6)
}
  0x44   : > { %884 = dma.hbm_to_vmem [thread:$0]  (!%p1292_p11), %s302_s8, 128, %s305_s1, %s294_s3  }
  0x45   : > { %313 = sbr.rel (%p1235_p8) target bundleno = 828 (0x33c), region = 48  ;;  %s1303_s22 = sand.u32 (!%p1235_p8), 1, %s1115_s25  }
  0x46   : > { %s776_s18 = sshll.u32 (!%p1235_p8), %s1303_s22, 3  ;;  %s316_s23 = scalar_lea.sflag (!%p1235_p8), [#allocation4], %s1303_s22 }
  0x47   : > { %s1309_s15 = scalar_lea.vmem (!%p1235_p8), [#allocation3], %s776_s18  ;;  %p1399_p12 = scmp.ne.s32.totalorder (!%p1235_p8), %s1390_s11, 0 }
  0x4a   : > { %1098 = dma.done.wait (%p1399_p12), %s316_s23, 128  }
  0x4b   : > { %1100 = vsyncadd (%p1399_p12), %s316_s23, 4294967168  ;;  %p1400_p3 = scmp.ne.s32.totalorder %s1388_s9, 0 }
  0x4d   : > { %1102 = dma.done.wait (%p1400_p3), [#allocation7], 2048  }
  0x4e   : > { %1104 = vsyncadd (%p1400_p3), [#allocation7], 4294965248  ;;  %v1138_v0 = vmov 0.0   ;;  %vm1139_vm0 = vmmov 0   ;;  %v949_v1 = vld [vmem:[#allocation6 + $0x38] sm:$0xff]   ;;  %v950_v2 = vld [vmem:[#allocation6 + $0x30] sm:$0xff]   ;;  %v611_v34 = vlaneseq }
  0x4f   : > { %822 = vmatprep.subr.bf16.mxu0 %v1138_v0  ;;  %838 = vmatprep.mubr.msk.bf16.mxu0 %vm1139_vm0, %v1138_v0  ;;  %v951_v3 = vld [vmem:[#allocation6 + $0x28] sm:$0xff]   ;;  %v957_v4 = vld [vmem:[#allocation8 + $0x38] sm:$0xff]   ;;  %v952_v5 = vld [vmem:[#allocation6 + $0x20] sm:$0xff]   ;;  %s801_s10 = sshll.u32 %s1123_s27, 7  ;;  %s360_s19 = scalar_lea.vmem [#allocation9], %s776_s18 }
  0x50   : > { %842 = vmatprep.subr.bf16.mxu1 %v1138_v0  ;;  %858 = vmatprep.mubr.msk.bf16.mxu1 %vm1139_vm0, %v1138_v0  ;;  %v958_v6 = vld [vmem:[#allocation8 + $0x30] sm:$0xff]   ;;  %v953_v7 = vld [vmem:[#allocation6 + $0x18] sm:$0xff]   ;;  %v959_v8 = vld [vmem:[#allocation8 + $0x28] sm:$0xff]   ;;  %v612_v35 = vand.u32 127, %v611_v34  ;;  %s653_s17 = sshll.u32 %s360_s19, 4  ;;  %s640_s1 = scalar_lea.sflag [#allocation5], %s1303_s22  ;;  %s654_s17 = int_to_ptr.vmem [resolvable:$true] %s653_s17 }
  0x51   : > { %823 = vmatpush3.bf16.msra.mxu0 %v949_v1  ;;  %843 = vmatpush3.bf16.msra.mxu1 %v957_v4  ;;  %v954_v9 = vld [vmem:[#allocation6 + $0x10] sm:$0xff]   ;;  %v960_v10 = vld [vmem:[#allocation8 + $0x20] sm:$0xff]   ;;  %v955_v11 = vld [vmem:[#allocation6 + $0x8] sm:$0xff]   ;;  %s1047_s3 = scalar_lea.vmem %s654_s17, 128  ;;  %s1140_s9 = smov [#allocation9]  }
  0x52   : > { %824 = vmatprep.subr.bf16.mxu0 %v1138_v0  ;;  %844 = vmatprep.subr.bf16.mxu1 %v1138_v0  ;;  %v961_v12 = vld [vmem:[#allocation8 + $0x18] sm:$0xff]   ;;  %v956_v13 = vld [vmem:[#allocation6] sm:$0xff]   ;;  %v962_v15 = vld [vmem:[#allocation8 + $0x10] sm:$0xff]   ;;  %vm613_vm1 = vcmp.lt.s32.totalorder %v612_v35, 32  ;;  %p1048_p8 = scmp.ne.s32.totalorder %s654_s17, %s1047_s3  ;;  %s1051_s11 = sshll.u32 %s1140_s9, 4  ;;  %s1052_s11 = int_to_ptr.vmem [resolvable:$false] %s1051_s11 }
  0x53   : > { %v371_v14 = vld [vmem:[%s1309_s15] sm:$0xff]  ;;  %v963_v17 = vld [vmem:[#allocation8 + $0x8] sm:$0xff]   ;;  %v964_v18 = vld [vmem:[#allocation8] sm:$0xff]   ;;  %s651_s15 = scalar_lea.hbm %s1381_s7, %s801_s10  ;;  %s1053_s27 = scalar_lea.vmem %s1052_s11, 256 }
  0x54   : > { %v372_v16 = vpack.c.bf16 %v371_v14, %v371_v14  ;;  %v780_v19 = vld [vmem:[%s1376_s2] ss:$0 sm:$0xff]  ;;  %p1049_p9 = pnand %p1048_p8, %p1276_p7  ;;  %p1054_p2 = scmp.lt.s32.totalorder %s654_s17, %s1052_s11 }
  0x55   : > { %825 = vmatpush3.bf16.msra.mxu0 %v950_v2  ;;  %845 = vmatpush3.bf16.msra.mxu1 %v958_v6  ;;  %v797_v27 = vld [vmem:[%s1378_s4] ss:$0 sm:$0xff]  ;;  %p1055_p13 = scmp.lt.s32.totalorder %s1053_s27, %s1047_s3 }
  0x56   : > { %826 = vmatprep.subr.bf16.mxu0 %v1138_v0  ;;  %846 = vmatprep.subr.bf16.mxu1 %v1138_v0  ;;  %v798_v45 = vld [vmem:[%s1379_s5] ss:$0 sm:$0xff]  ;;  %p1050_p11 = pneg %p1049_p9 }
  0x57   : > { %v799_v47 = vld [vmem:[%s1380_s6] ss:$0 sm:$0xff]  ;;  %p1056_p0 = por %p1055_p13, %p1054_p2 }
  0x59   : > { %827 = vmatpush3.bf16.msra.mxu0 %v951_v3  ;;  %847 = vmatpush3.bf16.msra.mxu1 %v959_v8  ;;  %p1057_p5 = pnand %p1056_p0, %p1050_p11 }
  0x5a   : > { %828 = vmatprep.subr.bf16.mxu0 %v1138_v0  ;;  %848 = vmatprep.subr.bf16.mxu1 %v1138_v0 }
  0x5d   : > { %829 = vmatpush3.bf16.msra.mxu0 %v952_v5  ;;  %849 = vmatpush3.bf16.msra.mxu1 %v960_v10 }
  0x5e   : > { %830 = vmatprep.subr.bf16.mxu0 %v1138_v0  ;;  %850 = vmatprep.subr.bf16.mxu1 %v1138_v0 }
  0x61   : > { %831 = vmatpush3.bf16.msra.mxu0 %v953_v7  ;;  %851 = vmatpush3.bf16.msra.mxu1 %v961_v12 }
  0x62   : > { %832 = vmatprep.subr.bf16.mxu0 %v1138_v0  ;;  %852 = vmatprep.subr.bf16.mxu1 %v1138_v0 }
  0x65   : > { %833 = vmatpush3.bf16.msra.mxu0 %v954_v9  ;;  %853 = vmatpush3.bf16.msra.mxu1 %v962_v15 }
  0x66   : > { %834 = vmatprep.subr.bf16.mxu0 %v1138_v0  ;;  %854 = vmatprep.subr.bf16.mxu1 %v1138_v0 }
  0x69   : > { %835 = vmatpush3.bf16.msra.mxu0 %v955_v11  ;;  %855 = vmatpush3.bf16.msra.mxu1 %v963_v17 }
  0x6a   : > { %836 = vmatprep.subr.bf16.mxu0 %v1138_v0  ;;  %856 = vmatprep.subr.bf16.mxu1 %v1138_v0 }
  0x6d   : > { %837 = vmatpush3.bf16.msra.mxu0 %v956_v13  ;;  %857 = vmatpush3.bf16.msra.mxu1 %v964_v18 }
  0x70   : > { %839 = vmatmul.mubr.bf16.vlgmr.msra.gmra.mxu0 %v372_v16 }
 0x130   : > { %v478_v20 = vpop.f32.mrf.mxu0 }
 0x131   : > { %v479_v21 = vadd.f32 %v780_v19, %v478_v20 }
 0x132   : > { %v840_v22 = vpop.f32.mrf.mxu0 }
 0x133   : > { %v484_v23 = vmax.f32 %v479_v21, 0.0 }
 0x134   : > { %v481_v24 = vpop.f32.mrf.mxu0 }
 0x135   : > { %v485_v25 = vpack.c.bf16 %v484_v23, %v484_v23 }
 0x136   : > { %v841_v26 = vpop.f32.mrf.mxu0 }
 0x137   : > { %859 = vmatmul.mubr.bf16.vlgmr.msra.gmra.mxu1 %v485_v25 }
 0x1f7   : > { %v585_v28 = vpop.f32.mrf.mxu1 }
 0x1f8   : > { %v605_v29 = vadd.f32 %v797_v27, %v585_v28 }
 0x1f9   : > { %v860_v30 = vpop.f32.mrf.mxu1 }
 0x1fa   : > { %v606_v31 = vadd.f32 %v605_v29, %v371_v14 }
 0x1fb   : > { %v588_v32 = vpop.f32.mrf.mxu1 }
 0x1fc   : > { %607 = vadd.xlane.f32.xlu0 %v606_v31 }
 0x1fd   : > { %v861_v33 = vpop.f32.mrf.mxu1 }
 0x285   : > { %v608_v36 = vpop.xlane.xlu0 %607 }
 0x286   : > { %v609_v37 = vmul.f32 0.03125, %v608_v36 }
 0x288   : > { %v610_v38 = vsub.f32 %v606_v31, %v609_v37 }
 0x28a   : > { %v614_v39 = vsel %vm613_vm1, %v610_v38, 0.0 }
 0x28b   : > { %v615_v40 = vmul.f32 %v614_v39, %v614_v39 }
 0x28d   : > { %616 = vadd.xlane.f32.xlu0 %v615_v40 }
 0x316   : > { %v617_v41 = vpop.xlane.xlu0 %616 }
 0x317   : > { %v618_v42 = vmul.f32 0.03125, %v617_v41 }
 0x319   : > { %v619_v43 = vadd.f32 1e-06, %v618_v42 }
 0x31b   : > { %965 = vrsqrt.f32 %v619_v43 }
 0x328   : > { %v966_v44 = vpop.eup %965 }
 0x329   : > { %v621_v46 = vmul.f32 %v966_v44, %v614_v39 }
 0x32b   : > { %v629_v48 = vmul.f32 %v798_v45, %v621_v46 }
 0x32d   : > { %v637_v49 = vadd.f32 %v799_v47, %v629_v48 }
 0x32f   : > { %638 = vst [vmem:[%s360_s19] sm:$0xff] %v637_v49 }
 0x330   : > { %1060 = shalt.err (!%p1057_p5)
}
 0x331   : > { %s1061_s18 = scalar_lea.hbm %s651_s15, 128  ;;  %s1065_s30 = scalar_lea.hbm %s1381_s7, 256 }
 0x332   : > { %p1062_p10 = scmp.ne.s32.totalorder %s651_s15, %s1061_s18  ;;  %p1066_p6 = scmp.lt.s32.totalorder %s651_s15, %s1381_s7 }
 0x333   : > { %p1067_p12 = scmp.lt.s32.totalorder %s1065_s30, %s1061_s18 }
 0x334   : > { %p1063_p1 = pnand %p1062_p10, %p1276_p7 }
 0x335   : > { %p1068_p3 = por %p1067_p12, %p1066_p6 }
 0x336   : > { %p1064_p4 = pneg %p1063_p1 }
 0x338   : > { %p1069_p8 = pnand %p1068_p3, %p1064_p4 }
 0x33a   : > { %1072 = shalt.err (!%p1069_p8)
}
 0x33b   : > { %872 = dma.vmem_to_hbm [thread:$0]  (%p1276_p7), %s654_s17, 128, %s651_s15, %s640_s1  }
 0x33c PF: > { %s665_s10 = sand.u32 1, %s1111_s24   ;;  %p1401_p9 = scmp.ne.s32.totalorder %s1391_s12, 0 }
 0x33d   : > { %p1402_p11 = scmp.ge.s32.totalorder %s1131_s29, 2  ;;  %s666_s19 = scalar_lea.sflag [#allocation5], %s665_s10 }
 0x33f   : > { %p886_p2 = pnand %p1402_p11, %p1401_p9 }
 0x341   : > { %p887_p13 = pneg %p886_p2 }
 0x343   : > { %1106 = dma.done.wait (%p887_p13), %s666_s19, 128  }
 0x344   : > { %1108 = vsyncadd (%p887_p13), %s666_s19, 4294967168  ;;  %s24_s29 = sadd.s32 1, %s1131_s29   ;;  %s1403_s16 = sld [smem:[#allocation13_spill]] }
 0x345   : > { %p21_p0 = scmp.ge.s32.totalorder %s24_s29, 4   ;;  %s1404_s24 = smov %s1115_s25 }
 0x346   : > { %s1405_s25 = smov %s1119_s26  ;;  %s1406_s26 = smov %s1285_s21 }
 0x347   : > { %s1407_s27 = smov %s1127_s28  ;;  %23 = sbr.rel (!%p21_p0) target bundleno = 10 (0xa), region = 114 }
 0x34a   : > { %s1408_s28 = smov %s1403_s16 }
 0x34c   :  { %671 = vsyncpa [#allocation4], 1 }
 0x34d   :  { %673 = vsyncpa [#allocation4 + $0x1], 1 }
 0x34e   :  { %674 = vsyncpa [#allocation7], 1 }
 0x34f   :  { %675 = vsyncpa [#allocation5], 1 }
 0x350   :  { %677 = vsyncpa [#allocation5 + $0x1], 1 }

// kernel: tpu_custom_call.1
= control target key start
LH: loop header
LB: loop body
LE: loop exit
PB: predicated region body
PF: predicated region fallthrough
CT: control target
= control target key end

     0   :  { %s1374_s0 = inlined_call_operand.hbm [shape: f32[16,128], index: 0, kind: input, shape index: {}]   ;;  %s1375_s1 = inlined_call_operand.hbm [shape: bf16[128,128], index: 1, kind: input, shape index: {}]   ;;  %s1376_s2 = inlined_call_operand.vmem [shape: f32[1,128], index: 2, kind: input, shape index: {}]   ;;  %s1377_s3 = inlined_call_operand.hbm [shape: bf16[128,128], index: 3, kind: input, shape index: {}]   ;;  %s1378_s4 = inlined_call_operand.vmem [shape: f32[1,128], index: 4, kind: input, shape index: {}]   ;;  %s1379_s5 = inlined_call_operand.vmem [shape: f32[1,128], index: 5, kind: input, shape index: {}]   ;;  %s1380_s6 = inlined_call_operand.vmem [shape: f32[1,128], index: 6, kind: input, shape index: {}]   ;;  %s1381_s7 = inlined_call_operand.hbm [shape: f32[16,128], index: 7, kind: output, shape index: {}]  }
   0x1   :  { %1386 = sst [smem:[#allocation14_spill]] %s1375_s1 }
   0x2   :  { %1387 = sst [smem:[#allocation15_spill]] %s1377_s3 }
   0x3   :  { %12 = vsyncpa [#allocation4], 0 }
   0x4   :  { %14 = vsyncpa [#allocation4 + $0x1], 0 }
   0x5   :  { %15 = vsyncpa [#allocation7], 0 }
   0x6   :  { %16 = vsyncpa [#allocation5], 0 }
   0x7   :  { %18 = vsyncpa [#allocation5 + $0x1], 0  ;;  %s1181_s24 = smov 0   ;;  %s1183_s25 = smov 0  }
   0x8   :  { %s1185_s26 = smov 0   ;;  %s1187_s27 = smov 0  }
   0x9   :  { %s1189_s28 = smov 0   ;;  %s1191_s29 = smov 0  }
   0xa LB: > { %s766_s30 = sadd.s32 4294967295, %s1131_s29   ;;  %s767_s8 = sadd.s32 4294967294, %s1131_s29   ;;  %s1131_s29 = sphi %s1191_s29, %s24_s29   ;;  %s1127_s28 = sphi %s1189_s28, %s1408_s28   ;;  %s1123_s27 = sphi %s1187_s27, %s1407_s27   ;;  %s1119_s26 = sphi %s1185_s26, %s1406_s26   ;;  %s1115_s25 = sphi %s1183_s25, %s1405_s25   ;;  %s1111_s24 = sphi %s1181_s24, %s1404_s24  }
   0xb   : > { %p56_p0 = scmp.ne.s32.totalorder %s1115_s25, %s1111_s24  ;;  %p1215_p1 = scmp.eq.s32.totalorder %s766_s30, 0 }
   0xc   : > { %p1219_p2 = scmp.eq.s32.totalorder %s766_s30, 1  ;;  %p227_p3 = scmp.eq.s32.totalorder %s767_s8, 1 }
   0xd   : > { %s1388_s9 = scalar_select %p1215_p1, 1, 0 }
   0xe   : > { %p1225_p4 = por %p1215_p1, %p56_p0  ;;  %p768_p5 = scmp.ge.s32.totalorder %s1131_s29, 1 }
   0xf   : > { %p1230_p6 = por %p227_p3, %p56_p0  ;;  %p234_p7 = scmp.lt.s32.totalorder %s1131_s29, 3 }
  0x10   : > { %s1390_s11 = scalar_select %p1225_p4, 1, 0 }
  0x11   : > { %s1391_s12 = scalar_select %p1230_p6, 1, 0 }
  0x12   : > { %p1235_p8 = pnand %p768_p5, %p234_p7  ;;  %s1133_s14 = smov [#allocation6]  }
  0x13   : > { %s248_s15 = sshll.u32 %s1133_s14, 4  ;;  %s1134_s17 = smov [#allocation8]   ;;  %s249_s15 = int_to_ptr.vmem [resolvable:$true] %s248_s15 }
  0x14   : > { %p874_p9 = pneg %p1235_p8  ;;  %s270_s18 = sshll.u32 %s1134_s17, 4  ;;  %s271_s18 = int_to_ptr.vmem [resolvable:$true] %s270_s18 }
  0x15   : > { %s978_s19 = scalar_lea.vmem %s249_s15, 1024  ;;  %p986_p5 = scmp.lt.s32.totalorder %s249_s15, %s249_s15 }
  0x16   : > { %p1244_p11 = pnand %p874_p9, %p1215_p1  ;;  %p979_p13 = scmp.ne.s32.totalorder %s249_s15, %s978_s19 }
  0x17   : > { %p987_p7 = scmp.lt.s32.totalorder %s978_s19, %s978_s19 }
  0x18   : > { %p969_p12 = pneg %p1244_p11 }
  0x19   : > { %p988_p10 = por %p987_p7, %p986_p5 }
  0x1a   : > { %p981_p0 = pnand %p979_p13, %p969_p12 }
  0x1c   : > { %p982_p3 = pneg %p981_p0 }
  0x1e   : > { %p989_p9 = pnand %p988_p10, %p982_p3 }
  0x20   : > { %992 = shalt.err (!%p989_p9)
}
  0x21   : > { %s1135_s20 = smov 64   ;;  %s1136_s21 = smov 4  }
  0x22   : > { %s1394_s1 = sld [smem:[#allocation14_spill]]  ;;  %s1004_s30 = scalar_lea.vmem %s271_s18, 1024 }
  0x23   : > { %p1005_p6 = scmp.ne.s32.totalorder %s271_s18, %s1004_s30  ;;  %p1012_p1 = scmp.lt.s32.totalorder %s271_s18, %s271_s18 }
  0x24   : > { %p1013_p4 = scmp.lt.s32.totalorder %s1004_s30, %s1004_s30 }
  0x25   : > { %p1007_p13 = pnand %p1005_p6, %p969_p12 }
  0x26   : > { %p1014_p5 = por %p1013_p4, %p1012_p1 }
  0x27   : > { %p1008_p0 = pneg %p1007_p13 }
  0x28   : > { %877 = dma.hbm_to_vmem [thread:$0]  (!%p1244_p11), %s1394_s1, 1024, %s249_s15, [#allocation7], %s1135_s20, %s1135_s20, %s1136_s21  }
  0x29   : > { %p1015_p10 = pnand %p1014_p5, %p1008_p0 }
  0x2b   : > { %1018 = shalt.err (!%p1015_p10)
}
  0x2c   : > { %s1395_s3 = sld [smem:[#allocation15_spill]]  ;;  %s36_s15 = sadd.s32 1, %s1127_s28 }
  0x2d   : > { %s43_s17 = sadd.s32 1, %s1119_s26  ;;  %p38_p1 = scmp.ge.s32.totalorder %s36_s15, 2 }
  0x2e   : > { %p50_p4 = scmp.ne.s32.totalorder %s1119_s26, %s1115_s25  ;;  %p51_p6 = scmp.eq.s32.totalorder %s1131_s29, 0 }
  0x2f   : > { %p891_p12 = scmp.lt.s32.totalorder %s1131_s29, 2  ;;  %s1410_s15 = smov (%p38_p1, %s36_s15), 0 }
  0x30   : > { %1396 = sst [smem:[#allocation13_spill]] %s1410_s15  ;;  %p52_p3 = por %p51_p6, %p50_p4 }
  0x31   : > { %p1276_p7 = por %p1219_p2, %p50_p4  ;;  %s40_s19 = ssub.s32 %s1127_s28, %s1410_s15 }
  0x32   : > { %880 = dma.hbm_to_vmem [thread:$0]  (!%p1244_p11), %s1395_s3, 1024, %s271_s18, [#allocation7], %s1135_s20, %s1135_s20, %s1136_s21  }
  0x33   : > { %s293_s22 = sand.u32 1, %s1119_s26   ;;  %p41_p9 = scmp.eq.s32.totalorder %s40_s19, 0 }
  0x34   : > { %s773_s18 = sshll.u32 %s293_s22, 3  ;;  %s774_s20 = sshll.u32 %s1127_s28, 7 }
  0x35   : > { %s1285_s21 = scalar_select %p41_p9, %s1119_s26, %s43_s17  }
  0x36   : > { %s302_s8 = scalar_lea.hbm %s1374_s0, %s774_s20  ;;  %s297_s14 = scalar_lea.vmem [#allocation3], %s773_s18 }
  0x37   : > { %s304_s1 = sshll.u32 %s297_s14, 4  ;;  %p1292_p11 = pnand %p891_p12, %p52_p3  ;;  %s305_s1 = int_to_ptr.vmem [resolvable:$true] %s304_s1 }
  0x38   : > { %s294_s3 = scalar_lea.sflag [#allocation4], %s293_s22  ;;  %s1032_s19 = scalar_lea.vmem %s305_s1, 128 }
  0x39   : > { %p1021_p2 = pneg %p1292_p11  ;;  %p1033_p13 = scmp.ne.s32.totalorder %s305_s1, %s1032_s19 }
  0x3a   : > { %s1137_s17 = smov [#allocation3]  }
  0x3b   : > { %p1035_p0 = pnand %p1033_p13, %p1021_p2  ;;  %s1037_s15 = sshll.u32 %s1137_s17, 4  ;;  %s1038_s15 = int_to_ptr.vmem [resolvable:$false] %s1037_s15 }
  0x3c   : > { %s1039_s20 = scalar_lea.vmem %s1038_s15, 256  ;;  %p1040_p10 = scmp.lt.s32.totalorder %s305_s1, %s1038_s15 }
  0x3d   : > { %p1036_p5 = pneg %p1035_p0  ;;  %p1041_p1 = scmp.lt.s32.totalorder %s1039_s20, %s1032_s19 }
  0x3f   : > { %p1042_p4 = por %p1041_p1, %p1040_p10 }
  0x41   : > { %p1043_p6 = pnand %p1042_p4, %p1036_p5 }
  0x43   : > { %1046 = shalt.err (!%p1043_p6)
}
  0x44   : > { %884 = dma.hbm_to_vmem [thread:$0]  (!%p1292_p11), %s302_s8, 128, %s305_s1, %s294_s3  }
  0x45   : > { %313 = sbr.rel (%p1235_p8) target bundleno = 828 (0x33c), region = 48  ;;  %s1303_s22 = sand.u32 (!%p1235_p8), 1, %s1115_s25  }
  0x46   : > { %s776_s18 = sshll.u32 (!%p1235_p8), %s1303_s22, 3  ;;  %s316_s23 = scalar_lea.sflag (!%p1235_p8), [#allocation4], %s1303_s22 }
  0x47   : > { %s1309_s15 = scalar_lea.vmem (!%p1235_p8), [#allocation3], %s776_s18  ;;  %p1399_p12 = scmp.ne.s32.totalorder (!%p1235_p8), %s1390_s11, 0 }
  0x4a   : > { %1098 = dma.done.wait (%p1399_p12), %s316_s23, 128  }
  0x4b   : > { %1100 = vsyncadd (%p1399_p12), %s316_s23, 4294967168  ;;  %p1400_p3 = scmp.ne.s32.totalorder %s1388_s9, 0 }
  0x4d   : > { %1102 = dma.done.wait (%p1400_p3), [#allocation7], 2048  }
  0x4e   : > { %1104 = vsyncadd (%p1400_p3), [#allocation7], 4294965248  ;;  %v1138_v0 = vmov 0.0   ;;  %vm1139_vm0 = vmmov 0   ;;  %v949_v1 = vld [vmem:[#allocation6 + $0x38] sm:$0xff]   ;;  %v950_v2 = vld [vmem:[#allocation6 + $0x30] sm:$0xff]   ;;  %v611_v34 = vlaneseq }
  0x4f   : > { %822 = vmatprep.subr.bf16.mxu0 %v1138_v0  ;;  %838 = vmatprep.mubr.msk.bf16.mxu0 %vm1139_vm0, %v1138_v0  ;;  %v951_v3 = vld [vmem:[#allocation6 + $0x28] sm:$0xff]   ;;  %v957_v4 = vld [vmem:[#allocation8 + $0x38] sm:$0xff]   ;;  %v952_v5 = vld [vmem:[#allocation6 + $0x20] sm:$0xff]   ;;  %s801_s10 = sshll.u32 %s1123_s27, 7  ;;  %s360_s19 = scalar_lea.vmem [#allocation9], %s776_s18 }
  0x50   : > { %842 = vmatprep.subr.bf16.mxu1 %v1138_v0  ;;  %858 = vmatprep.mubr.msk.bf16.mxu1 %vm1139_vm0, %v1138_v0  ;;  %v958_v6 = vld [vmem:[#allocation8 + $0x30] sm:$0xff]   ;;  %v953_v7 = vld [vmem:[#allocation6 + $0x18] sm:$0xff]   ;;  %v959_v8 = vld [vmem:[#allocation8 + $0x28] sm:$0xff]   ;;  %v612_v35 = vand.u32 127, %v611_v34  ;;  %s653_s17 = sshll.u32 %s360_s19, 4  ;;  %s640_s1 = scalar_lea.sflag [#allocation5], %s1303_s22  ;;  %s654_s17 = int_to_ptr.vmem [resolvable:$true] %s653_s17 }
  0x51   : > { %823 = vmatpush3.bf16.msra.mxu0 %v949_v1  ;;  %843 = vmatpush3.bf16.msra.mxu1 %v957_v4  ;;  %v954_v9 = vld [vmem:[#allocation6 + $0x10] sm:$0xff]   ;;  %v960_v10 = vld [vmem:[#allocation8 + $0x20] sm:$0xff]   ;;  %v955_v11 = vld [vmem:[#allocation6 + $0x8] sm:$0xff]   ;;  %s1047_s3 = scalar_lea.vmem %s654_s17, 128  ;;  %s1140_s9 = smov [#allocation9]  }
  0x52   : > { %824 = vmatprep.subr.bf16.mxu0 %v1138_v0  ;;  %844 = vmatprep.subr.bf16.mxu1 %v1138_v0  ;;  %v961_v12 = vld [vmem:[#allocation8 + $0x18] sm:$0xff]   ;;  %v956_v13 = vld [vmem:[#allocation6] sm:$0xff]   ;;  %v962_v15 = vld [vmem:[#allocation8 + $0x10] sm:$0xff]   ;;  %vm613_vm1 = vcmp.lt.s32.totalorder %v612_v35, 32  ;;  %p1048_p8 = scmp.ne.s32.totalorder %s654_s17, %s1047_s3  ;;  %s1051_s11 = sshll.u32 %s1140_s9, 4  ;;  %s1052_s11 = int_to_ptr.vmem [resolvable:$false] %s1051_s11 }
  0x53   : > { %v371_v14 = vld [vmem:[%s1309_s15] sm:$0xff]  ;;  %v963_v17 = vld [vmem:[#allocation8 + $0x8] sm:$0xff]   ;;  %v964_v18 = vld [vmem:[#allocation8] sm:$0xff]   ;;  %s651_s15 = scalar_lea.hbm %s1381_s7, %s801_s10  ;;  %s1053_s27 = scalar_lea.vmem %s1052_s11, 256 }
  0x54   : > { %v372_v16 = vpack.c.bf16 %v371_v14, %v371_v14  ;;  %v780_v19 = vld [vmem:[%s1376_s2] ss:$0 sm:$0xff]  ;;  %p1049_p9 = pnand %p1048_p8, %p1276_p7  ;;  %p1054_p2 = scmp.lt.s32.totalorder %s654_s17, %s1052_s11 }
  0x55   : > { %825 = vmatpush3.bf16.msra.mxu0 %v950_v2  ;;  %845 = vmatpush3.bf16.msra.mxu1 %v958_v6  ;;  %v797_v27 = vld [vmem:[%s1378_s4] ss:$0 sm:$0xff]  ;;  %p1055_p13 = scmp.lt.s32.totalorder %s1053_s27, %s1047_s3 }
  0x56   : > { %826 = vmatprep.subr.bf16.mxu0 %v1138_v0  ;;  %846 = vmatprep.subr.bf16.mxu1 %v1138_v0  ;;  %v798_v45 = vld [vmem:[%s1379_s5] ss:$0 sm:$0xff]  ;;  %p1050_p11 = pneg %p1049_p9 }
  0x57   : > { %v799_v47 = vld [vmem:[%s1380_s6] ss:$0 sm:$0xff]  ;;  %p1056_p0 = por %p1055_p13, %p1054_p2 }
  0x59   : > { %827 = vmatpush3.bf16.msra.mxu0 %v951_v3  ;;  %847 = vmatpush3.bf16.msra.mxu1 %v959_v8  ;;  %p1057_p5 = pnand %p1056_p0, %p1050_p11 }
  0x5a   : > { %828 = vmatprep.subr.bf16.mxu0 %v1138_v0  ;;  %848 = vmatprep.subr.bf16.mxu1 %v1138_v0 }
  0x5d   : > { %829 = vmatpush3.bf16.msra.mxu0 %v952_v5  ;;  %849 = vmatpush3.bf16.msra.mxu1 %v960_v10 }
  0x5e   : > { %830 = vmatprep.subr.bf16.mxu0 %v1138_v0  ;;  %850 = vmatprep.subr.bf16.mxu1 %v1138_v0 }
  0x61   : > { %831 = vmatpush3.bf16.msra.mxu0 %v953_v7  ;;  %851 = vmatpush3.bf16.msra.mxu1 %v961_v12 }
  0x62   : > { %832 = vmatprep.subr.bf16.mxu0 %v1138_v0  ;;  %852 = vmatprep.subr.bf16.mxu1 %v1138_v0 }
  0x65   : > { %833 = vmatpush3.bf16.msra.mxu0 %v954_v9  ;;  %853 = vmatpush3.bf16.msra.mxu1 %v962_v15 }
  0x66   : > { %834 = vmatprep.subr.bf16.mxu0 %v1138_v0  ;;  %854 = vmatprep.subr.bf16.mxu1 %v1138_v0 }
  0x69   : > { %835 = vmatpush3.bf16.msra.mxu0 %v955_v11  ;;  %855 = vmatpush3.bf16.msra.mxu1 %v963_v17 }
  0x6a   : > { %836 = vmatprep.subr.bf16.mxu0 %v1138_v0  ;;  %856 = vmatprep.subr.bf16.mxu1 %v1138_v0 }
  0x6d   : > { %837 = vmatpush3.bf16.msra.mxu0 %v956_v13  ;;  %857 = vmatpush3.bf16.msra.mxu1 %v964_v18 }
  0x70   : > { %839 = vmatmul.mubr.bf16.vlgmr.msra.gmra.mxu0 %v372_v16 }
 0x130   : > { %v478_v20 = vpop.f32.mrf.mxu0 }
 0x131   : > { %v479_v21 = vadd.f32 %v780_v19, %v478_v20 }
 0x132   : > { %v840_v22 = vpop.f32.mrf.mxu0 }
 0x133   : > { %v484_v23 = vmax.f32 %v479_v21, 0.0 }
 0x134   : > { %v481_v24 = vpop.f32.mrf.mxu0 }
 0x135   : > { %v485_v25 = vpack.c.bf16 %v484_v23, %v484_v23 }
 0x136   : > { %v841_v26 = vpop.f32.mrf.mxu0 }
 0x137   : > { %859 = vmatmul.mubr.bf16.vlgmr.msra.gmra.mxu1 %v485_v25 }
 0x1f7   : > { %v585_v28 = vpop.f32.mrf.mxu1 }
 0x1f8   : > { %v605_v29 = vadd.f32 %v797_v27, %v585_v28 }
 0x1f9   : > { %v860_v30 = vpop.f32.mrf.mxu1 }
 0x1fa   : > { %v606_v31 = vadd.f32 %v605_v29, %v371_v14 }
 0x1fb   : > { %v588_v32 = vpop.f32.mrf.mxu1 }
 0x1fc   : > { %607 = vadd.xlane.f32.xlu0 %v606_v31 }
 0x1fd   : > { %v861_v33 = vpop.f32.mrf.mxu1 }
 0x285   : > { %v608_v36 = vpop.xlane.xlu0 %607 }
 0x286   : > { %v609_v37 = vmul.f32 0.03125, %v608_v36 }
 0x288   : > { %v610_v38 = vsub.f32 %v606_v31, %v609_v37 }
 0x28a   : > { %v614_v39 = vsel %vm613_vm1, %v610_v38, 0.0 }
 0x28b   : > { %v615_v40 = vmul.f32 %v614_v39, %v614_v39 }
 0x28d   : > { %616 = vadd.xlane.f32.xlu0 %v615_v40 }
 0x316   : > { %v617_v41 = vpop.xlane.xlu0 %616 }
 0x317   : > { %v618_v42 = vmul.f32 0.03125, %v617_v41 }
 0x319   : > { %v619_v43 = vadd.f32 1e-06, %v618_v42 }
 0x31b   : > { %965 = vrsqrt.f32 %v619_v43 }
 0x328   : > { %v966_v44 = vpop.eup %965 }
 0x329   : > { %v621_v46 = vmul.f32 %v966_v44, %v614_v39 }
 0x32b   : > { %v629_v48 = vmul.f32 %v798_v45, %v621_v46 }
 0x32d   : > { %v637_v49 = vadd.f32 %v799_v47, %v629_v48 }
 0x32f   : > { %638 = vst [vmem:[%s360_s19] sm:$0xff] %v637_v49 }
 0x330   : > { %1060 = shalt.err (!%p1057_p5)
}
 0x331   : > { %s1061_s18 = scalar_lea.hbm %s651_s15, 128  ;;  %s1065_s30 = scalar_lea.hbm %s1381_s7, 256 }
 0x332   : > { %p1062_p10 = scmp.ne.s32.totalorder %s651_s15, %s1061_s18  ;;  %p1066_p6 = scmp.lt.s32.totalorder %s651_s15, %s1381_s7 }
 0x333   : > { %p1067_p12 = scmp.lt.s32.totalorder %s1065_s30, %s1061_s18 }
 0x334   : > { %p1063_p1 = pnand %p1062_p10, %p1276_p7 }
 0x335   : > { %p1068_p3 = por %p1067_p12, %p1066_p6 }
 0x336   : > { %p1064_p4 = pneg %p1063_p1 }
 0x338   : > { %p1069_p8 = pnand %p1068_p3, %p1064_p4 }
 0x33a   : > { %1072 = shalt.err (!%p1069_p8)
}
 0x33b   : > { %872 = dma.vmem_to_hbm [thread:$0]  (%p1276_p7), %s654_s17, 128, %s651_s15, %s640_s1  }
 0x33c PF: > { %s665_s10 = sand.u32 1, %s1111_s24   ;;  %p1401_p9 = scmp.ne.s32.totalorder %s1391_s12, 0 }
 0x33d   : > { %p1402_p11 = scmp.ge.s32.totalorder %s1131_s29, 2  ;;  %s666_s19 = scalar_lea.sflag [#allocation5], %s665_s10 }
 0x33f   : > { %p886_p2 = pnand %p1402_p11, %p1401_p9 }
 0x341   : > { %p887_p13 = pneg %p886_p2 }
 0x343   : > { %1106 = dma.done.wait (%p887_p13), %s666_s19, 128  }
 0x344   : > { %1108 = vsyncadd (%p887_p13), %s666_s19, 4294967168  ;;  %s24_s29 = sadd.s32 1, %s1131_s29   ;;  %s1403_s16 = sld [smem:[#allocation13_spill]] }
 0x345   : > { %p21_p0 = scmp.ge.s32.totalorder %s24_s29, 4   ;;  %s1404_s24 = smov %s1115_s25 }
 0x346   : > { %s1405_s25 = smov %s1119_s26  ;;  %s1406_s26 = smov %s1285_s21 }
 0x347   : > { %s1407_s27 = smov %s1127_s28  ;;  %23 = sbr.rel (!%p21_p0) target bundleno = 10 (0xa), region = 114 }
 0x34a   : > { %s1408_s28 = smov %s1403_s16 }
 0x34c   :  { %671 = vsyncpa [#allocation4], 1 }
 0x34d   :  { %673 = vsyncpa [#allocation4 + $0x1], 1 }
 0x34e   :  { %674 = vsyncpa [#allocation7], 1 }
 0x34f   :  { %675 = vsyncpa [#allocation5], 1 }
 0x350   :  { %677 = vsyncpa [#allocation5 + $0x1], 1 }

</bundles_post_ra>
